<compile_context>
chip_gen: v7x
topology: tpu7x:2x2x1
jax: 0.10.0
libtpu: 0.0.40
codegen_flags: <defaults>
</compile_context>

<pallas_src>
import functools
import math

import jax
import jax.numpy as jnp
from jax.experimental import pallas as pl
from jax.experimental.pallas import tpu as pltpu


def _round_up(x: int, m: int) -> int:
    return -(-x // m) * m


def _cdiv(a: int, b: int) -> int:
    return -(-a // b)


def _vmem_capacity_bytes() -> int:
    """Physical VMEM per core; conservative fallback if the query is unavailable."""
    try:
        info = pltpu.get_tpu_info()
        cap = getattr(info, "vmem_capacity_bytes", None)
        if cap:
            return int(cap)
    except Exception:
        pass
    return 64 * 1024 * 1024  # smallest of v5e/v6e/v7x (v7x per-TC)


def _num_tensorcores() -> int:
    """Best-effort TensorCore count; defaults to 1 (v5e/v6e) if unknown."""
    try:
        info = pltpu.get_tpu_info()
        for attr in ("num_tensorcores", "tensorcore_count", "num_cores", "core_count"):
            v = getattr(info, attr, None)
            if v:
                return int(v)
    except Exception:
        pass
    try:
        v = getattr(jax.devices()[0], "num_cores", None)
        if v:
            return int(v)
    except Exception:
        pass
    return 1


def _rmsnorm_kernel(x_ref, w_ref, o_ref, *, eps: float, inv_dim: float):
    # fold == 1 path: one f32 XLU lane reduction per row strip.
    x = x_ref[...].astype(jnp.float32)
    ms = jnp.sum(x * x, axis=-1, keepdims=True) * inv_dim
    normed = (x * jax.lax.rsqrt(ms + eps)).astype(x_ref.dtype)
    o_ref[...] = (w_ref[...] * normed).astype(o_ref.dtype)


def _rmsnorm_folded_kernel(x_ref, w_ref, b_ref, o_ref, *, eps: float):
    # fold > 1 path: `fold` logical rows share one 128-lane physical row.
    # Segmented mean-of-squares on the MXU: B is block-diagonal with 1/dim in
    # each dim x dim group, so (sq @ B)[:, j] is the mean of squares of lane
    # j's group.  hi/lo bf16 split keeps ~f32 precision (1/dim is an exact
    # power of two, so the bf16 products are exact and accumulate in f32).
    x = x_ref[...].astype(jnp.float32)
    sq = x * x
    hi = sq.astype(jnp.bfloat16)
    lo = (sq - hi.astype(jnp.float32)).astype(jnp.bfloat16)
    b = b_ref[...]
    ms = (jnp.dot(hi, b, preferred_element_type=jnp.float32)
          + jnp.dot(lo, b, preferred_element_type=jnp.float32))
    normed = (x * jax.lax.rsqrt(ms + eps)).astype(x_ref.dtype)
    o_ref[...] = (w_ref[...] * normed).astype(o_ref.dtype)


def enhanced_rms_norm(x: jax.Array, weight: jax.Array, eps: float = 1e-5) -> jax.Array:
    """RMSNorm over the last axis of `x`, scaled by `weight` (shape [dim])."""
    orig_shape = x.shape
    dim = orig_shape[-1]
    assert weight.shape == (dim,), "weight must have shape (dim,)"
    rows = math.prod(orig_shape[:-1]) if len(orig_shape) > 1 else 1
    out_dtype = jnp.result_type(x.dtype, weight.dtype)  # torch: weight * normed promotes

    # ---- lane-dense layout selection --------------------------------------
    fold, lane_pad = 1, 0
    if dim % 128 == 0:
        width = dim
    elif dim < 128 and 128 % dim == 0 and rows % (128 // dim) == 0:
        fold = 128 // dim            # pack `fold` logical rows per 128-lane row
        width = 128
    else:
        # Fallback: zero-pad the feature axis up to a multiple of 128 so stores
        # stay unmasked.  Zeros contribute nothing to sum(x*x) and the kernel
        # divides by the true `dim`; padded output lanes are 0 and sliced off.
        width = _round_up(dim, 128)
        lane_pad = width - dim

    rows_f = rows // fold
    x2d = x.reshape(rows_f, fold * dim)
    if lane_pad:
        x2d = jnp.pad(x2d, ((0, 0), (0, lane_pad)))

    w_row = weight if fold == 1 else jnp.tile(weight, fold)
    if lane_pad:
        w_row = jnp.pad(w_row, (0, lane_pad))
    w_row = w_row.reshape(1, width)

    # ---- VMEM-aware row tiling ---------------------------------------------
    in_item = jnp.dtype(x.dtype).itemsize
    out_item = jnp.dtype(out_dtype).itemsize
    min_rows = max(8, 32 // max(min(in_item, out_item), 1))   # dtype sublane packing

    vmem_cap = _vmem_capacity_bytes()
    budget = max(16 << 20, min(32 << 20, vmem_cap // 4))

    # Resident blocks: weight row and (fold>1) the bf16 reduction matrix.
    resident = 2 * width * jnp.dtype(weight.dtype).itemsize
    if fold > 1:
        resident += 2 * width * width * 2

    # Per streamed row: double-buffered in + out blocks, PLUS the f32 compute
    # temporaries (x_f32, sq, normed) that live alongside them.
    per_row = 2 * width * (in_item + out_item) + 3 * width * 4
    cap_rows = max(min_rows, (budget - resident) // per_row)
    cap_rows = int(min(cap_rows, 2048))

    # Multi-TensorCore parts (v7x): aim for >= 2 grid steps per core so each
    # core gets a pipelined stream.  Single-TC chips (v5e/v6e) are never
    # force-split: one big tile avoids per-step overhead.
    ncores = _num_tensorcores()
    if ncores > 1 and rows_f >= 2 * ncores * min_rows:
        cap_rows = min(cap_rows, _round_up(_cdiv(rows_f, 2 * ncores), min_rows))

    if rows_f <= min_rows:
        tile = rows_f                                   # full extent -> always legal
    else:
        tile = min(cap_rows, rows_f)
        tile = max(min_rows, (tile // min_rows) * min_rows)

    # Ragged tails are handled by Pallas partial trailing blocks: no jnp.pad /
    # output-slice round trips (those cost a full HBM read+write each).
    grid_steps = _cdiv(rows_f, tile)

    # ---- kernel selection & specs ------------------------------------------
    in_specs = [
        pl.BlockSpec((tile, width), lambda i: (i, 0)),   # streamed x rows
        pl.BlockSpec((1, width), lambda i: (0, 0)),      # resident weight row
    ]
    args = [x2d, w_row]
    if fold > 1:
        lane = jnp.arange(width)
        bmat = jnp.where((lane[:, None] // dim) == (lane[None, :] // dim),
                         1.0 / dim, 0.0).astype(jnp.bfloat16)
        in_specs.append(pl.BlockSpec((width, width), lambda i: (0, 0)))
        args.append(bmat)
        kernel = functools.partial(_rmsnorm_folded_kernel, eps=float(eps))
    else:
        kernel = functools.partial(_rmsnorm_kernel, eps=float(eps),
                                   inv_dim=1.0 / float(dim))

    out = pl.pallas_call(
        kernel,
        out_shape=jax.ShapeDtypeStruct((rows_f, width), out_dtype),
        grid_spec=pltpu.PrefetchScalarGridSpec(
            num_scalar_prefetch=0,
            grid=(grid_steps,),
            in_specs=in_specs,
            out_specs=pl.BlockSpec((tile, width), lambda i: (i, 0)),
        ),
        compiler_params=pltpu.CompilerParams(
            dimension_semantics=("parallel",),
            vmem_limit_bytes=int(min(vmem_cap, 2 * budget)),
        ),
    )(*args)

    if lane_pad:
        out = out[:, :dim]
    return out.reshape(orig_shape)


def _reference(x, weight, eps):
    xf = x.astype(jnp.float32)
    normed = xf * jax.lax.rsqrt(jnp.mean(xf * xf, axis=-1, keepdims=True) + eps)
    normed = normed.astype(x.dtype)
    return weight * normed


if __name__ == "__main__":
    key = jax.random.PRNGKey(0)
    k1, k2, k3 = jax.random.split(key, 3)

    # Shapes implied by the module's forward: (batch, seq, hidden), hidden = dim.
    batch, seq, hidden = 2, 8, 32
    x = jax.random.normal(k1, (batch, seq, hidden), dtype=jnp.float32)
    weight = jnp.ones((hidden,), dtype=jnp.float32)   # nn.Parameter(torch.ones(dim))

    y = jax.block_until_ready(enhanced_rms_norm(x, weight, eps=1e-5))
    ref = _reference(x, weight, 1e-5)
    assert y.shape == x.shape
    assert jnp.allclose(y, ref, atol=1e-5, rtol=1e-5)

    # fold == 1 path (dim a multiple of 128).
    x2 = jax.random.normal(k2, (4, 16, 128), dtype=jnp.float32)
    w2 = 1.0 + 0.1 * jax.random.normal(k2, (128,), dtype=jnp.float32)
    y2 = jax.block_until_ready(enhanced_rms_norm(x2, w2, eps=1e-5))
    assert jnp.allclose(y2, _reference(x2, w2, 1e-5), atol=1e-5, rtol=1e-5)

    # Ragged row count -> multi-step grid with a partial trailing block
    # (exercises the no-pad/no-slice path).
    x3 = jax.random.normal(k3, (3, 7, 256), dtype=jnp.float32)
    w3 = jnp.ones((256,), dtype=jnp.float32)
    y3 = jax.block_until_ready(enhanced_rms_norm(x3, w3, eps=1e-5))
    assert jnp.allclose(y3, _reference(x3, w3, 1e-5), atol=1e-5, rtol=1e-5)

    print("KERNEL_OK")
</pallas_src>

<mosaic_0001>
module attributes {stable_mosaic.version = 11 : i64} {
  func.func @_rmsnorm_folded_kernel(%arg0: i32, %arg1: memref<4x128xf32, #tpu.memory_space<vmem>>, %arg2: memref<1x128xf32, #tpu.memory_space<vmem>>, %arg3: memref<128x128xbf16, #tpu.memory_space<vmem>>, %arg4: memref<4x128xf32, #tpu.memory_space<vmem>>) attributes {dimension_semantics = [#tpu.dimension_semantics<parallel>], iteration_bounds = array<i64: 1>, scalar_prefetch = 0 : i64, scratch_operands = 0 : i64, tpu.core_type = #tpu.core_type<tc>, window_params = [{transform_indices = @transform_0, window_bounds = array<i64: 4, 128>}, {pipeline_mode = #tpu.pipeline_mode<synchronous>, transform_indices = @transform_1, window_bounds = array<i64: 1, 128>}, {pipeline_mode = #tpu.pipeline_mode<synchronous>, transform_indices = @transform_2, window_bounds = array<i64: 128, 128>}, {transform_indices = @transform_3, window_bounds = array<i64: 4, 128>}]} {
    %c0 = arith.constant 0 : index
    %c0_0 = arith.constant 0 : index
    %0 = vector.load %arg1[%c0, %c0_0] : memref<4x128xf32, #tpu.memory_space<vmem>>, vector<4x128xf32>
    %1 = arith.mulf %0, %0 : vector<4x128xf32>
    %2 = arith.truncf %1 : vector<4x128xf32> to vector<4x128xbf16>
    %3 = arith.extf %2 : vector<4x128xbf16> to vector<4x128xf32>
    %4 = arith.subf %1, %3 : vector<4x128xf32>
    %5 = arith.truncf %4 : vector<4x128xf32> to vector<4x128xbf16>
    %c0_1 = arith.constant 0 : index
    %c0_2 = arith.constant 0 : index
    %6 = vector.load %arg3[%c0_1, %c0_2] : memref<128x128xbf16, #tpu.memory_space<vmem>>, vector<128x128xbf16>
    %cst = arith.constant dense<0.000000e+00> : vector<4x128xf32>
    %7 = tpu.matmul %2, %6, %cst {dimension_numbers = #tpu.dot_dimension_numbers<[1], [0], [0], [1], [0, 0, 1, 1], [], []>} : vector<4x128xbf16>, vector<128x128xbf16>, vector<4x128xf32> -> vector<4x128xf32>
    %cst_3 = arith.constant dense<0.000000e+00> : vector<4x128xf32>
    %8 = tpu.matmul %5, %6, %cst_3 {dimension_numbers = #tpu.dot_dimension_numbers<[1], [0], [0], [1], [0, 0, 1, 1], [], []>} : vector<4x128xbf16>, vector<128x128xbf16>, vector<4x128xf32> -> vector<4x128xf32>
    %9 = arith.addf %7, %8 : vector<4x128xf32>
    %cst_4 = arith.constant 9.99999974E-6 : f32
    %10 = vector.broadcast %cst_4 : f32 to vector<4x128xf32>
    %11 = arith.addf %9, %10 : vector<4x128xf32>
    %12 = math.rsqrt %11 : vector<4x128xf32>
    %13 = arith.mulf %0, %12 : vector<4x128xf32>
    %c0_5 = arith.constant 0 : index
    %c0_6 = arith.constant 0 : index
    %14 = vector.load %arg2[%c0_5, %c0_6] : memref<1x128xf32, #tpu.memory_space<vmem>>, vector<1x128xf32>
    %15 = vector.broadcast %14 : vector<1x128xf32> to vector<4x128xf32>
    %16 = arith.mulf %15, %13 : vector<4x128xf32>
    %c0_7 = arith.constant 0 : index
    %c0_8 = arith.constant 0 : index
    %17 = vector.load %arg4[%c0_7, %c0_8] : memref<4x128xf32, #tpu.memory_space<vmem>>, vector<4x128xf32>
    tpu.vector_store %arg4[%c0_7, %c0_8], %16 {strides = array<i32>} : memref<4x128xf32, #tpu.memory_space<vmem>>, vector<4x128xf32>,
    return
  }
  func.func @transform_0(%arg0: i32) -> (i32, i32) {
    %c0_i32 = arith.constant 0 : i32
    %c0_i32_0 = arith.constant 0 : i32
    return %arg0, %c0_i32 : i32, i32
  }
  func.func @transform_1(%arg0: i32) -> (i32, i32) {
    %c0_i32 = arith.constant 0 : i32
    %c0_i32_0 = arith.constant 0 : i32
    %c0_i32_1 = arith.constant 0 : i32
    return %c0_i32, %c0_i32_0 : i32, i32
  }
  func.func @transform_2(%arg0: i32) -> (i32, i32) {
    %c0_i32 = arith.constant 0 : i32
    %c0_i32_0 = arith.constant 0 : i32
    %c0_i32_1 = arith.constant 0 : i32
    return %c0_i32, %c0_i32_0 : i32, i32
  }
  func.func @transform_3(%arg0: i32) -> (i32, i32) {
    %c0_i32 = arith.constant 0 : i32
    %c0_i32_0 = arith.constant 0 : i32
    return %arg0, %c0_i32 : i32, i32
  }
}

</mosaic_0001>

<bundles_post_ra>
// kernel: tpu_custom_call.1
= control target key start
LH: loop header
LB: loop body
LE: loop exit
PB: predicated region body
PF: predicated region fallthrough
CT: control target
= control target key end

     0   :  { %8 = vsyncpa [#allocation3], 0  ;;  %s449_s0 = inlined_call_operand.hbm [shape: f32[4,128], index: 0, kind: input, shape index: {}]   ;;  %s450_s1 = inlined_call_operand.vmem [shape: f32[1,128], index: 1, kind: input, shape index: {}]   ;;  %s451_s2 = inlined_call_operand.hbm [shape: bf16[128,128], index: 2, kind: input, shape index: {}]   ;;  %s452_s3 = inlined_call_operand.hbm [shape: f32[4,128], index: 3, kind: output, shape index: {}]  }
   0x1   :  { %9 = vsyncpa [#allocation6], 0 }
   0x2   :  { %10 = vsyncpa [#allocation4], 0  ;;  %s376_s12 = smov [#allocation2]   ;;  %s377_s14 = smov [#allocation5]  }
   0x3   :  { %s17_s13 = sshll.u32 %s376_s12, 4  ;;  %s28_s15 = sshll.u32 %s377_s14, 4  ;;  %s18_s13 = int_to_ptr.vmem [resolvable:$true] %s17_s13  ;;  %s403_s15 = int_to_ptr.vmem [resolvable:$true] %s28_s15 }
   0x4   :  { %s304_s18 = scalar_lea.hbm %s449_s0, 64 }
   0x5   :  { %p305_p0 = scmp.ne.s32.totalorder %s449_s0, %s304_s18  ;;  %p308_p1 = scmp.lt.u32.totalorder %s304_s18, %s449_s0 }
   0x7   :  { %p310_p2 = pnand %p308_p1, %p305_p0 }
   0x9   :  { %313 = shalt.err (!%p310_p2)
}
   0xa   :  { %s314_s23 = scalar_lea.vmem %s18_s13, 64  ;;  %p319_p4 = scmp.lt.s32.totalorder %s18_s13, %s18_s13 }
   0xb   :  { %p315_p3 = scmp.ne.s32.totalorder %s18_s13, %s314_s23  ;;  %p320_p5 = scmp.lt.s32.totalorder %s314_s23, %s314_s23 }
   0xd   :  { %p321_p6 = por %p320_p5, %p319_p4 }
   0xf   :  { %p322_p7 = pnand %p321_p6, %p315_p3 }
  0x11   :  { %325 = shalt.err (!%p322_p7)
}
  0x12   :  { %20 = dma.hbm_to_vmem [thread:$0]  %s449_s0, 64, %s18_s13, [#allocation3]  }
  0x13   :  { %s326_s28 = scalar_lea.hbm %s451_s2, 1024 }
  0x14   :  { %p327_p8 = scmp.ne.s32.totalorder %s451_s2, %s326_s28  ;;  %p330_p9 = scmp.lt.u32.totalorder %s326_s28, %s451_s2 }
  0x16   :  { %p332_p10 = pnand %p330_p9, %p327_p8 }
  0x18   :  { %335 = shalt.err (!%p332_p10)
}
  0x19   :  { %s336_s6 = scalar_lea.vmem %s403_s15, 1024  ;;  %p341_p12 = scmp.lt.s32.totalorder %s403_s15, %s403_s15 }
  0x1a   :  { %p337_p11 = scmp.ne.s32.totalorder %s403_s15, %s336_s6  ;;  %p342_p13 = scmp.lt.s32.totalorder %s336_s6, %s336_s6 }
  0x1c   :  { %p343_p0 = por %p342_p13, %p341_p12 }
  0x1e   :  { %p344_p1 = pnand %p343_p0, %p337_p11 }
  0x20   :  { %347 = shalt.err (!%p344_p1)
}
  0x21   :  { %s378_s0 = smov 64   ;;  %s379_s7 = smov 4  }
  0x22   :  { %34 = dma.hbm_to_vmem [thread:$0]  %s451_s2, 1024, %s403_s15, [#allocation6], %s378_s0, %s378_s0, %s379_s7  }
  0x23   :  { %370 = dma.done.wait [#allocation3], 64  }
  0x24   :  { %371 = vsyncadd [#allocation3], 4294967232 }
  0x25   :  { %372 = dma.done.wait [#allocation6], 1024  }
  0x26   :  { %373 = vsyncadd [#allocation6], 4294966272  ;;  %v380_v0 = vmov 0.0   ;;  %vm381_vm0 = vmmov 0   ;;  %v294_v1 = vld [vmem:[#allocation5] sm:$0xff]   ;;  %v295_v2 = vld [vmem:[#allocation5 + $0x8] sm:$0xff]  }
  0x27   :  { %247 = vmatprep.subr.bf16.mxu0 %v380_v0  ;;  %267 = vmatprep.subr.bf16.mxu1 %v380_v0  ;;  %v296_v3 = vld [vmem:[#allocation5 + $0x10] sm:$0xff]   ;;  %v297_v4 = vld [vmem:[#allocation5 + $0x18] sm:$0xff]   ;;  %v298_v7 = vld [vmem:[#allocation5 + $0x20] sm:$0xff]   ;;  %s382_s11 = smov [#allocation7]  }
  0x28   :  { %263 = vmatprep.mubr.msk.bf16.mxu0 %vm381_vm0, %v380_v0  ;;  %283 = vmatprep.mubr.msk.bf16.mxu1 %vm381_vm0, %v380_v0  ;;  %v42_v5 = vld [vmem:[#allocation2] sm:$0xf]  ;;  %v299_v9 = vld [vmem:[#allocation5 + $0x28] sm:$0xff]   ;;  %v300_v11 = vld [vmem:[#allocation5 + $0x30] sm:$0xff]   ;;  %s210_s12 = sshll.u32 %s382_s11, 4  ;;  %s211_s12 = int_to_ptr.vmem [resolvable:$true] %s210_s12 }
  0x29   :  { %248 = vmatpush3.bf16.msra.mxu0 %v294_v1  ;;  %268 = vmatpush3.bf16.msra.mxu1 %v294_v1  ;;  %v43_v6 = vmul.f32 %v42_v5, %v42_v5  ;;  %v301_v13 = vld [vmem:[#allocation5 + $0x38] sm:$0xff]   ;;  %s348_s13 = scalar_lea.vmem %s211_s12, 64  ;;  %p353_p3 = scmp.lt.s32.totalorder %s211_s12, %s211_s12 }
  0x2a   :  { %249 = vmatprep.subr.bf16.mxu0 %v380_v0  ;;  %269 = vmatprep.subr.bf16.mxu1 %v380_v0  ;;  %v228_v26 = vld [vmem:[%s450_s1] ss:$0 sm:$0xff]  ;;  %p349_p2 = scmp.ne.s32.totalorder %s211_s12, %s348_s13  ;;  %p354_p4 = scmp.lt.s32.totalorder %s348_s13, %s348_s13 }
  0x2b   :  { %v44_v8 = vpack.c.bf16 %v43_v6, %v43_v6 }
  0x2c   :  { %p355_p5 = por %p354_p4, %p353_p3 }
  0x2d   :  { %250 = vmatpush3.bf16.msra.mxu0 %v295_v2  ;;  %270 = vmatpush3.bf16.msra.mxu1 %v295_v2  ;;  %v45_v10 = vunpack.c.l.bf16 %v44_v8 }
  0x2e   :  { %251 = vmatprep.subr.bf16.mxu0 %v380_v0  ;;  %271 = vmatprep.subr.bf16.mxu1 %v380_v0  ;;  %p356_p6 = pnand %p355_p5, %p349_p2 }
  0x2f   :  { %v46_v12 = vsub.f32 %v43_v6, %v45_v10 }
  0x31   :  { %252 = vmatpush3.bf16.msra.mxu0 %v296_v3  ;;  %272 = vmatpush3.bf16.msra.mxu1 %v296_v3  ;;  %v47_v14 = vpack.c.bf16 %v46_v12, %v46_v12 }
  0x32   :  { %253 = vmatprep.subr.bf16.mxu0 %v380_v0  ;;  %273 = vmatprep.subr.bf16.mxu1 %v380_v0 }
  0x35   :  { %254 = vmatpush3.bf16.msra.mxu0 %v297_v4  ;;  %274 = vmatpush3.bf16.msra.mxu1 %v297_v4 }
  0x36   :  { %255 = vmatprep.subr.bf16.mxu0 %v380_v0  ;;  %275 = vmatprep.subr.bf16.mxu1 %v380_v0 }
  0x39   :  { %256 = vmatpush3.bf16.msra.mxu0 %v298_v7  ;;  %276 = vmatpush3.bf16.msra.mxu1 %v298_v7 }
  0x3a   :  { %257 = vmatprep.subr.bf16.mxu0 %v380_v0  ;;  %277 = vmatprep.subr.bf16.mxu1 %v380_v0 }
  0x3d   :  { %258 = vmatpush3.bf16.msra.mxu0 %v299_v9  ;;  %278 = vmatpush3.bf16.msra.mxu1 %v299_v9 }
  0x3e   :  { %259 = vmatprep.subr.bf16.mxu0 %v380_v0  ;;  %279 = vmatprep.subr.bf16.mxu1 %v380_v0 }
  0x41   :  { %260 = vmatpush3.bf16.msra.mxu0 %v300_v11  ;;  %280 = vmatpush3.bf16.msra.mxu1 %v300_v11 }
  0x42   :  { %261 = vmatprep.subr.bf16.mxu0 %v380_v0  ;;  %281 = vmatprep.subr.bf16.mxu1 %v380_v0 }
  0x45   :  { %262 = vmatpush3.bf16.msra.mxu0 %v301_v13  ;;  %282 = vmatpush3.bf16.msra.mxu1 %v301_v13 }
  0x48   :  { %264 = vmatmul.mubr.bf16.vlgmr.msra.gmra.mrb[0].mxu0 %v47_v14  ;;  %284 = vmatmul.mubr.bf16.vlgmr.msra.gmra.mrb[0].mxu1 %v44_v8 }
 0x11b   :  { %v146_v15 = vpop.f32.mrb[0].mxu0  ;;  %v186_v16 = vpop.f32.mrb[0].mxu1 }
 0x11c   :  { %v187_v17 = vadd.f32 %v186_v16, %v146_v15  ;;  %v265_v18 = vpop.f32.mrb[1].mxu0  ;;  %v285_v19 = vpop.f32.mrb[1].mxu1 }
 0x11d   :  { %v149_v20 = vpop.f32.mrb[2].mxu0  ;;  %v189_v21 = vpop.f32.mrb[2].mxu1 }
 0x11e   :  { %v192_v22 = vadd.f32 1e-05, %v187_v17  ;;  %v266_v23 = vpop.f32.mrb[3].mxu0  ;;  %v286_v24 = vpop.f32.mrb[3].mxu1 }
 0x120   :  { %302 = vrsqrt.f32 %v192_v22 }
 0x12a   :  { %v303_v25 = vpop.eup %302 }
 0x12b   :  { %v194_v27 = vmul.f32 %v303_v25, %v42_v5 }
 0x12d   :  { %v202_v28 = vmul.f32 %v228_v26, %v194_v27 }
 0x12f   :  { %203 = vst [vmem:[#allocation7] sm:$0xf] %v202_v28 }
 0x130   :  { %359 = shalt.err (!%p356_p6)
}
 0x131   :  { %s360_s16 = scalar_lea.hbm %s452_s3, 64 }
 0x132   :  { %p361_p7 = scmp.ne.s32.totalorder %s452_s3, %s360_s16  ;;  %p364_p8 = scmp.lt.u32.totalorder %s360_s16, %s452_s3 }
 0x134   :  { %p366_p9 = pnand %p364_p8, %p361_p7 }
 0x136   :  { %369 = shalt.err (!%p366_p9)
}
 0x137   :  { %213 = dma.vmem_to_hbm [thread:$0]  %s211_s12, 64, %s452_s3, [#allocation4]  }
 0x138   :  { %374 = dma.done.wait [#allocation4], 64  }
 0x139   :  { %375 = vsyncadd [#allocation4], 4294967232 }
 0x13a   :  { %217 = vsyncpa [#allocation3], 1 }
 0x13b   :  { %218 = vsyncpa [#allocation6], 1 }
 0x13c   :  { %219 = vsyncpa [#allocation4], 1 }

</bundles_post_ra>
